<compile_context>
chip_gen: v5e
topology: v5e:2x2
jax: 0.10.0
libtpu: 0.0.40
codegen_flags: <defaults>
</compile_context>

<pallas_src>
import functools

import jax
import jax.numpy as jnp
from jax import lax
from jax.experimental import pallas as pl
from jax.experimental.pallas import tpu as pltpu

EPS = 1e-5          # nn.BatchNorm2d default eps
NEG_SLOPE = 0.01    # nn.LeakyReLU default negative_slope
K = 3
STRIDE = 2
PADDING = 1
LANES = 128
SUBLANES = 8


def _round_up(v, m):
    return ((v + m - 1) // m) * m


def _conv_stats_kernel(p_ref, w_ref, y_ref, sum_ref, sq_ref, *,
                       rows_total, tile_rows, cout_p8, need_mask):
    """One row tile: conv as a single bf16 MXU matmul + per-tile BN partials.

    p_ref   : (TR, KD)    bf16 im2col patches for this tile
    w_ref   : (KD, Cn)    bf16 weights, Cn = Cout padded to 128 lanes
    y_ref   : (TR, C8)    f32 conv output, only the real (sublane-padded) channels
    sum_ref : (1, 1, Cn)  f32 per-tile masked sum
    sq_ref  : (1, 1, Cn)  f32 per-tile masked sum of squares
    """
    acc = jnp.dot(p_ref[...], w_ref[...], preferred_element_type=jnp.float32)
    y_ref[...] = acc[:, :cout_p8]

    if need_mask:
        row0 = pl.program_id(0) * tile_rows
        rid = lax.broadcasted_iota(jnp.int32, (tile_rows, 1), 0) + row0
        av = jnp.where(rid < rows_total, acc, 0.0)
    else:
        av = acc
    sum_ref[...] = jnp.sum(av, axis=0, keepdims=True)[None]
    sq_ref[...] = jnp.sum(av * acc, axis=0, keepdims=True)[None]


def _bn_act_kernel(y_ref, scale_ref, shift_ref, o_ref):
    """Folded BN scale/shift + LeakyReLU, all f32 on the VPU (v5e-safe)."""
    y = y_ref[...] * scale_ref[...] + shift_ref[...]
    o_ref[...] = jnp.where(y >= 0, y, NEG_SLOPE * y)


def _pick_row_tile(rows, target):
    """Row tile: multiple of 8, <= ~target; prefer an EVEN grid count >= 2 so
    the 'parallel' grid axis splits across v7x's two TensorCores."""
    if rows <= max(target, SUBLANES):
        t = -(-rows // 2) if rows > SUBLANES else rows
    else:
        g = -(-rows // target)
        if g % 2:
            g += 1
        t = -(-rows // g)
    return max(SUBLANES, _round_up(t, SUBLANES))


def _pick_bn_tile(tr1, g1, target):
    """Kernel-2 tile: a multiple of the kernel-1 tile dividing the padded row
    count, as large as `target` allows, keeping >= 2 grid steps if available."""
    for d in range(g1, 0, -1):
        if g1 % d:
            continue
        if tr1 * d <= target and (g1 < 2 or g1 // d >= 2):
            return tr1 * d
    return tr1


def conv_block(x_nchw, weight, bias, gamma, beta, *,
               row_tile=512, bn_row_tile=2048):
    """ConvBlock forward: Conv2d(k=3,s=2,p=1) + BatchNorm2d(train) + LeakyReLU.

    x_nchw : (B, Cin, H, W)      NCHW (PyTorch convention)
    weight : (Cout, Cin, 3, 3)   nn.Conv2d weight
    bias, gamma, beta : (Cout,)
    returns (B, Cout, Ho, Wo) float32
    """
    del bias  # exactly cancelled by training-mode BatchNorm's mean subtraction
    B, Cin, H, W = x_nchw.shape
    Cout = weight.shape[0]
    Ho = (H + 2 * PADDING - K) // STRIDE + 1
    Wo = (W + 2 * PADDING - K) // STRIDE + 1
    R = B * Ho * Wo
    KD = K * K * Cin
    Cn = _round_up(Cout, LANES)      # matmul lane width (dense MXU/VPU tiles)
    C8 = _round_up(Cout, SUBLANES)   # channels actually stored to HBM

    # ---- wrapper-side layout glue: bf16 from the start (halves im2col HBM) --
    x = jnp.transpose(x_nchw, (0, 2, 3, 1)).astype(jnp.bfloat16)
    xp = jnp.pad(x, ((0, 0), (PADDING, PADDING), (PADDING, PADDING), (0, 0)))
    taps = []
    for kh in range(K):
        for kw in range(K):
            taps.append(xp[:, kh:kh + STRIDE * Ho - 1:STRIDE,
                           kw:kw + STRIDE * Wo - 1:STRIDE, :])
    patches = jnp.stack(taps, axis=3).reshape(R, KD)
    # TODO(synk): for very large Cin*H*W, gather the 9 taps in-kernel instead
    # of materializing the (R, K*K*Cin) im2col operand in HBM.

    # (Cout, Cin, K, K) -> (K*K*Cin, Cout) -> lane-pad for a dense MXU operand.
    w2 = jnp.transpose(weight, (2, 3, 1, 0)).reshape(KD, Cout)
    w2 = jnp.pad(w2, ((0, 0), (0, Cn - Cout))).astype(jnp.bfloat16)

    # ---- tiling: big row tiles, even grid, VMEM-bounded (v7x = 64 MiB) ------
    vmem_cap_rows = max(SUBLANES, (20 * 2**20) // (2 * (2 * KD + 4 * C8)))
    TR = _pick_row_tile(R, min(row_tile, vmem_cap_rows))
    G = -(-R // TR)
    RP = G * TR
    if RP > R:
        patches = jnp.pad(patches, ((0, RP - R), (0, 0)))
    TR2 = _pick_bn_tile(TR, G, bn_row_tile)
    G2 = RP // TR2

    cparams = pltpu.CompilerParams(
        dimension_semantics=("parallel",),          # megacore-splittable on v7x
        vmem_limit_bytes=32 * 1024 * 1024,          # tiles sized well below this
    )

    # ---- kernel 1: conv (single matmul per tile) + per-tile BN partials -----
    kernel1 = functools.partial(
        _conv_stats_kernel, rows_total=R, tile_rows=TR, cout_p8=C8,
        need_mask=(RP != R))
    conv_out, tile_sum, tile_sq = pl.pallas_call(
        kernel1,
        grid=(G,),
        in_specs=[
            pl.BlockSpec((TR, KD), lambda i: (i, 0)),
            pl.BlockSpec((KD, Cn), lambda i: (0, 0)),
        ],
        out_specs=[
            pl.BlockSpec((TR, C8), lambda i: (i, 0)),
            pl.BlockSpec((1, 1, Cn), lambda i: (i, 0, 0)),
            pl.BlockSpec((1, 1, Cn), lambda i: (i, 0, 0)),
        ],
        out_shape=[
            jax.ShapeDtypeStruct((RP, C8), jnp.float32),
            jax.ShapeDtypeStruct((G, 1, Cn), jnp.float32),
            jax.ShapeDtypeStruct((G, 1, Cn), jnp.float32),
        ],
        compiler_params=cparams,
    )(patches, w2)

    # ---- global BN statistics from the per-tile masked partial sums ---------
    total = jnp.sum(tile_sum[:, 0, :C8], axis=0)
    total_sq = jnp.sum(tile_sq[:, 0, :C8], axis=0)
    mean = total / R
    var = jnp.maximum(total_sq / R - mean * mean, 0.0)   # biased (BN training)
    gamma8 = jnp.pad(gamma.astype(jnp.float32), (0, C8 - Cout))
    beta8 = jnp.pad(beta.astype(jnp.float32), (0, C8 - Cout))
    scale = (gamma8 * lax.rsqrt(var + EPS)).reshape(1, C8)
    shift = (beta8 - mean * scale[0]).reshape(1, C8)

    # ---- kernel 2: normalize + LeakyReLU, in place over the intermediate ----
    y2 = pl.pallas_call(
        _bn_act_kernel,
        grid=(G2,),
        in_specs=[
            pl.BlockSpec((TR2, C8), lambda i: (i, 0)),
            pl.BlockSpec((1, C8), lambda i: (0, 0)),
            pl.BlockSpec((1, C8), lambda i: (0, 0)),
        ],
        out_specs=pl.BlockSpec((TR2, C8), lambda i: (i, 0)),
        out_shape=jax.ShapeDtypeStruct((RP, C8), jnp.float32),
        input_output_aliases={0: 0},
        compiler_params=cparams,
    )(conv_out, scale, shift)

    # Only unpadded data remains: tiny slice + NHWC->NCHW relayout (16x less
    # traffic than relayouting a 128-lane-padded buffer).
    y = y2[:R, :Cout].reshape(B, Ho, Wo, Cout)
    return jnp.transpose(y, (0, 3, 1, 2))


def _reference(xi, wi, bias, gamma, beta):
    """Conv2d(+bias) + BatchNorm2d(train) + LeakyReLU via lax."""
    conv = lax.conv_general_dilated(
        xi, wi, window_strides=(STRIDE, STRIDE),
        padding=((PADDING, PADDING), (PADDING, PADDING)),
        dimension_numbers=("NCHW", "OIHW", "NCHW"),
        precision=lax.Precision.HIGHEST,
    ) + bias[None, :, None, None]   # bias included: BN cancels it exactly
    mu = jnp.mean(conv, axis=(0, 2, 3), keepdims=True)
    var = jnp.mean((conv - mu) ** 2, axis=(0, 2, 3), keepdims=True)
    out = (conv - mu) * lax.rsqrt(var + EPS)
    out = out * gamma[None, :, None, None] + beta[None, :, None, None]
    return jnp.where(out >= 0, out, NEG_SLOPE * out)


if __name__ == "__main__":
    B, Cin, Cout, H, W = 2, 4, 8, 16, 16

    key = jax.random.PRNGKey(0)
    k1, k2, k3, k4, k5 = jax.random.split(key, 5)
    x = jax.random.normal(k1, (B, Cin, H, W), jnp.float32)
    weight = 0.1 * jax.random.normal(k2, (Cout, Cin, K, K), jnp.float32)
    bias = 0.1 * jax.random.normal(k3, (Cout,), jnp.float32)
    gamma = 1.0 + 0.1 * jax.random.normal(k4, (Cout,), jnp.float32)
    beta = 0.1 * jax.random.normal(k5, (Cout,), jnp.float32)

    # row_tile=32 -> 4 kernel-1 grid steps and a merged 2-step kernel-2 grid at
    # these toy shapes: exercises the pipelined grid + decoupled BN tile.
    fwd = jax.jit(functools.partial(conv_block, row_tile=32))
    y = jax.block_until_ready(fwd(x, weight, bias, gamma, beta))

    def check(y_out, xi, wi):
        # Matched precision contract (bf16-rounded conv inputs, f32 accumulation).
        xr = xi.astype(jnp.bfloat16).astype(jnp.float32)
        wr = wi.astype(jnp.bfloat16).astype(jnp.float32)
        ref_bf16 = _reference(xr, wr, bias, gamma, beta)
        ref_f32 = _reference(xi, wi, bias, gamma, beta)
        assert y_out.shape == ref_f32.shape, (y_out.shape, ref_f32.shape)
        assert jnp.allclose(y_out, ref_bf16, atol=5e-4, rtol=5e-4), float(
            jnp.max(jnp.abs(y_out - ref_bf16)))
        assert jnp.allclose(y_out, ref_f32, atol=5e-2, rtol=5e-2), float(
            jnp.max(jnp.abs(y_out - ref_f32)))

    Ho = (H + 2 * PADDING - K) // STRIDE + 1
    assert y.shape == (B, Cout, Ho, Ho), y.shape
    check(y, x, weight)

    # Ragged-row-count shape (R = 2*7*7 = 98): exercises the zero-padded last
    # tile + masked statistics path.
    x2 = jax.random.normal(k1, (B, Cin, 13, 13), jnp.float32)
    y2 = jax.block_until_ready(fwd(x2, weight, bias, gamma, beta))
    check(y2, x2, weight)

    print("KERNEL_OK")
</pallas_src>

<mosaic_0001>
module attributes {stable_mosaic.version = 11 : i64} {
  func.func @_conv_stats_kernel(%arg0: i32, %arg1: memref<32x36xbf16, #tpu.memory_space<vmem>>, %arg2: memref<36x128xbf16, #tpu.memory_space<vmem>>, %arg3: memref<32x8xf32, #tpu.memory_space<vmem>>, %arg4: memref<1x1x128xf32, #tpu.memory_space<vmem>>, %arg5: memref<1x1x128xf32, #tpu.memory_space<vmem>>) attributes {dimension_semantics = [#tpu.dimension_semantics<parallel>], iteration_bounds = array<i64: 4>, scalar_prefetch = 0 : i64, scratch_operands = 0 : i64, tpu.core_type = #tpu.core_type<tc>, window_params = [{transform_indices = @transform_0, window_bounds = array<i64: 32, 36>}, {pipeline_mode = #tpu.pipeline_mode<synchronous>, transform_indices = @transform_1, window_bounds = array<i64: 36, 128>}, {transform_indices = @transform_2, window_bounds = array<i64: 32, 8>}, {transform_indices = @transform_3, window_bounds = array<i64: 1, 1, 128>}, {transform_indices = @transform_4, window_bounds = array<i64: 1, 1, 128>}]} {
    %c0 = arith.constant 0 : index
    %c0_0 = arith.constant 0 : index
    %0 = vector.load %arg1[%c0, %c0_0] : memref<32x36xbf16, #tpu.memory_space<vmem>>, vector<32x36xbf16>
    %c0_1 = arith.constant 0 : index
    %c0_2 = arith.constant 0 : index
    %1 = vector.load %arg2[%c0_1, %c0_2] : memref<36x128xbf16, #tpu.memory_space<vmem>>, vector<36x128xbf16>
    %cst = arith.constant dense<0.000000e+00> : vector<32x128xf32>
    %2 = tpu.matmul %0, %1, %cst {dimension_numbers = #tpu.dot_dimension_numbers<[1], [0], [0], [1], [0, 0, 1, 1], [], []>} : vector<32x36xbf16>, vector<36x128xbf16>, vector<32x128xf32> -> vector<32x128xf32>
    %3 = vector.extract_strided_slice %2 {offsets = [0, 0], sizes = [32, 8], strides = [1, 1]} : vector<32x128xf32> to vector<32x8xf32>
    %c0_3 = arith.constant 0 : index
    %c0_4 = arith.constant 0 : index
    %4 = vector.load %arg3[%c0_3, %c0_4] : memref<32x8xf32, #tpu.memory_space<vmem>>, vector<32x8xf32>
    tpu.vector_store %arg3[%c0_3, %c0_4], %3 {strides = array<i32>} : memref<32x8xf32, #tpu.memory_space<vmem>>, vector<32x8xf32>,
    %cst_5 = arith.constant dense<0.000000e+00> : vector<128xf32>
    %5 = vector.multi_reduction <add>, %2, %cst_5 [0] : vector<32x128xf32> to vector<128xf32>
    %6 = vector.shape_cast %5 : vector<128xf32> to vector<1x128xf32>
    %7 = vector.shape_cast %6 : vector<1x128xf32> to vector<1x1x128xf32>
    %c0_6 = arith.constant 0 : index
    %c0_7 = arith.constant 0 : index
    %c0_8 = arith.constant 0 : index
    %8 = vector.load %arg4[%c0_6, %c0_7, %c0_8] : memref<1x1x128xf32, #tpu.memory_space<vmem>>, vector<1x1x128xf32>
    tpu.vector_store %arg4[%c0_6, %c0_7, %c0_8], %7 {strides = array<i32>} : memref<1x1x128xf32, #tpu.memory_space<vmem>>, vector<1x1x128xf32>,
    %9 = arith.mulf %2, %2 : vector<32x128xf32>
    %cst_9 = arith.constant dense<0.000000e+00> : vector<128xf32>
    %10 = vector.multi_reduction <add>, %9, %cst_9 [0] : vector<32x128xf32> to vector<128xf32>
    %11 = vector.shape_cast %10 : vector<128xf32> to vector<1x128xf32>
    %12 = vector.shape_cast %11 : vector<1x128xf32> to vector<1x1x128xf32>
    %c0_10 = arith.constant 0 : index
    %c0_11 = arith.constant 0 : index
    %c0_12 = arith.constant 0 : index
    %13 = vector.load %arg5[%c0_10, %c0_11, %c0_12] : memref<1x1x128xf32, #tpu.memory_space<vmem>>, vector<1x1x128xf32>
    tpu.vector_store %arg5[%c0_10, %c0_11, %c0_12], %12 {strides = array<i32>} : memref<1x1x128xf32, #tpu.memory_space<vmem>>, vector<1x1x128xf32>,
    return
  }
  func.func @transform_0(%arg0: i32) -> (i32, i32) {
    %c0_i32 = arith.constant 0 : i32
    %c0_i32_0 = arith.constant 0 : i32
    return %arg0, %c0_i32 : i32, i32
  }
  func.func @transform_1(%arg0: i32) -> (i32, i32) {
    %c0_i32 = arith.constant 0 : i32
    %c0_i32_0 = arith.constant 0 : i32
    %c0_i32_1 = arith.constant 0 : i32
    return %c0_i32, %c0_i32_0 : i32, i32
  }
  func.func @transform_2(%arg0: i32) -> (i32, i32) {
    %c0_i32 = arith.constant 0 : i32
    %c0_i32_0 = arith.constant 0 : i32
    return %arg0, %c0_i32 : i32, i32
  }
  func.func @transform_3(%arg0: i32) -> (i32, i32, i32) {
    %c0_i32 = arith.constant 0 : i32
    %c0_i32_0 = arith.constant 0 : i32
    %c0_i32_1 = arith.constant 0 : i32
    return %arg0, %c0_i32, %c0_i32_0 : i32, i32, i32
  }
  func.func @transform_4(%arg0: i32) -> (i32, i32, i32) {
    %c0_i32 = arith.constant 0 : i32
    %c0_i32_0 = arith.constant 0 : i32
    %c0_i32_1 = arith.constant 0 : i32
    return %arg0, %c0_i32, %c0_i32_0 : i32, i32, i32
  }
}

module attributes {stable_mosaic.version = 11 : i64} {
  func.func @_bn_act_kernel(%arg0: i32, %arg1: memref<64x8xf32, #tpu.memory_space<vmem>>, %arg2: memref<1x8xf32, #tpu.memory_space<vmem>>, %arg3: memref<1x8xf32, #tpu.memory_space<vmem>>, %arg4: memref<64x8xf32, #tpu.memory_space<vmem>>) attributes {dimension_semantics = [#tpu.dimension_semantics<parallel>], iteration_bounds = array<i64: 2>, scalar_prefetch = 0 : i64, scratch_operands = 0 : i64, tpu.core_type = #tpu.core_type<tc>, window_params = [{transform_indices = @transform_0, window_bounds = array<i64: 64, 8>}, {pipeline_mode = #tpu.pipeline_mode<synchronous>, transform_indices = @transform_1, window_bounds = array<i64: 1, 8>}, {pipeline_mode = #tpu.pipeline_mode<synchronous>, transform_indices = @transform_2, window_bounds = array<i64: 1, 8>}, {transform_indices = @transform_3, window_bounds = array<i64: 64, 8>}]} {
    %c0 = arith.constant 0 : index
    %c0_0 = arith.constant 0 : index
    %0 = vector.load %arg1[%c0, %c0_0] : memref<64x8xf32, #tpu.memory_space<vmem>>, vector<64x8xf32>
    %c0_1 = arith.constant 0 : index
    %c0_2 = arith.constant 0 : index
    %1 = vector.load %arg2[%c0_1, %c0_2] : memref<1x8xf32, #tpu.memory_space<vmem>>, vector<1x8xf32>
    %2 = vector.broadcast %1 : vector<1x8xf32> to vector<64x8xf32>
    %3 = arith.mulf %0, %2 : vector<64x8xf32>
    %c0_3 = arith.constant 0 : index
    %c0_4 = arith.constant 0 : index
    %4 = vector.load %arg3[%c0_3, %c0_4] : memref<1x8xf32, #tpu.memory_space<vmem>>, vector<1x8xf32>
    %5 = vector.broadcast %4 : vector<1x8xf32> to vector<64x8xf32>
    %6 = arith.addf %3, %5 : vector<64x8xf32>
    %cst = arith.constant 0.000000e+00 : f32
    %7 = vector.broadcast %cst : f32 to vector<64x8xf32>
    %8 = arith.cmpf oge, %6, %7 : vector<64x8xf32>
    %cst_5 = arith.constant 0.00999999977 : f32
    %9 = vector.broadcast %cst_5 : f32 to vector<64x8xf32>
    %10 = arith.mulf %9, %6 : vector<64x8xf32>
    %11 = arith.select %8, %6, %10 : vector<64x8xi1>, vector<64x8xf32>
    %c0_6 = arith.constant 0 : index
    %c0_7 = arith.constant 0 : index
    %12 = vector.load %arg4[%c0_6, %c0_7] : memref<64x8xf32, #tpu.memory_space<vmem>>, vector<64x8xf32>
    tpu.vector_store %arg4[%c0_6, %c0_7], %11 {strides = array<i32>} : memref<64x8xf32, #tpu.memory_space<vmem>>, vector<64x8xf32>,
    return
  }
  func.func @transform_0(%arg0: i32) -> (i32, i32) {
    %c0_i32 = arith.constant 0 : i32
    %c0_i32_0 = arith.constant 0 : i32
    return %arg0, %c0_i32 : i32, i32
  }
  func.func @transform_1(%arg0: i32) -> (i32, i32) {
    %c0_i32 = arith.constant 0 : i32
    %c0_i32_0 = arith.constant 0 : i32
    %c0_i32_1 = arith.constant 0 : i32
    return %c0_i32, %c0_i32_0 : i32, i32
  }
  func.func @transform_2(%arg0: i32) -> (i32, i32) {
    %c0_i32 = arith.constant 0 : i32
    %c0_i32_0 = arith.constant 0 : i32
    %c0_i32_1 = arith.constant 0 : i32
    return %c0_i32, %c0_i32_0 : i32, i32
  }
  func.func @transform_3(%arg0: i32) -> (i32, i32) {
    %c0_i32 = arith.constant 0 : i32
    %c0_i32_0 = arith.constant 0 : i32
    return %arg0, %c0_i32 : i32, i32
  }
}

</mosaic_0001>

<bundles_post_ra>
// kernel: conv_block.3
= control target key start
LH: loop header
LB: loop body
LE: loop exit
PB: predicated region body
PF: predicated region fallthrough
CT: control target
= control target key end

     0   :  { %s344_s12 = smov 0   ;;  %s388_s0 = inlined_call_operand.vmem [shape: f32[128,8], index: 0, kind: input, shape index: {}, may-alias: {0,3}]   ;;  %s389_s1 = inlined_call_operand.vmem [shape: f32[1,8], index: 1, kind: input, shape index: {}]   ;;  %s390_s2 = inlined_call_operand.vmem [shape: f32[1,8], index: 2, kind: input, shape index: {}]   ;;  %s391_s3 = inlined_call_operand.vmem [shape: f32[128,8], index: 3, kind: output, shape index: {}, may-alias: {0,3}]  }
   0x1 LB: > { %s295_s13 = sadd.s32 4294967295, %s322_s12   ;;  %p299_p0 = scmp.ge.s32.totalorder %s322_s12, 1  ;;  %s322_s12 = sphi %s344_s12, %s13_s12  }
   0x2   : > { %p138_p1 = scmp.lt.s32.totalorder %s322_s12, 3 }
   0x4   : > { %p139_p2 = pnand %p299_p0, %p138_p1 }
   0x5   : > { %s300_s14 = sshll.u32 (!%p139_p2), %s295_s13, 3 }
   0x6   : > { %142 = sbr.rel (%p139_p2) target bundleno = 30 (0x1e), region = 32  ;;  %p163_p3 = scmp.lt.s32.totalorder (!%p139_p2), %s300_s14, 15 }
   0xb   : > { %s393_s14 = smov (!%p163_p3, %s300_s14), 15  ;;  %v314_v0 = vld [vmem:[%s389_s1] ss:$0 sm:$0xff]  ;;  %vm230_vm0 = vcmask 64512  }
   0xc   : > { %s301_s17 = sshll.u32 %s393_s14, 3  ;;  %v315_v1 = vld [vmem:[%s390_s2] ss:$0 sm:$0xff] }
   0xd   : > { %s166_s20 = scalar_lea.vmem %s388_s0, %s301_s17  ;;  %s367_s25 = scalar_lea.vmem %s391_s3, %s301_s17 }
   0xe   : > { %v174_v2 = vld [vmem:[%s166_s20] sm:$0xff]  ;;  %v175_v3 = vld [vmem:[%s166_s20 + $0x8] sm:$0xff]  ;;  %v176_v4 = vld [vmem:[%s166_s20 + $0x10] sm:$0xff] }
   0xf   : > { %v177_v5 = vld [vmem:[%s166_s20 + $0x18] sm:$0xff]  ;;  %v178_v6 = vld [vmem:[%s166_s20 + $0x20] sm:$0xff]  ;;  %v179_v7 = vld [vmem:[%s166_s20 + $0x28] sm:$0xff]  ;;  %v186_v8 = vmul.f32 %v314_v0, %v174_v2  ;;  %v187_v9 = vmul.f32 %v314_v0, %v175_v3  ;;  %v188_v10 = vmul.f32 %v314_v0, %v176_v4 }
  0x10   : > { %v180_v11 = vld [vmem:[%s166_s20 + $0x30] sm:$0xff]  ;;  %v181_v12 = vld [vmem:[%s166_s20 + $0x38] sm:$0xff]  ;;  %v189_v13 = vmul.f32 %v314_v0, %v177_v5  ;;  %v190_v14 = vmul.f32 %v314_v0, %v178_v6  ;;  %v191_v15 = vmul.f32 %v314_v0, %v179_v7 }
  0x11   : > { %v198_v16 = vadd.f32 %v315_v1, %v186_v8  ;;  %v199_v17 = vadd.f32 %v315_v1, %v187_v9  ;;  %v200_v18 = vadd.f32 %v315_v1, %v188_v10  ;;  %v192_v19 = vmul.f32 %v314_v0, %v180_v11 }
  0x12   : > { %v201_v20 = vadd.f32 %v315_v1, %v189_v13  ;;  %v202_v21 = vadd.f32 %v315_v1, %v190_v14  ;;  %v203_v22 = vadd.f32 %v315_v1, %v191_v15  ;;  %v193_v23 = vmul.f32 %v314_v0, %v181_v12 }
  0x13   : > { %vm206_vm1 = vcmp.ge.f32.partialorder %v198_v16, 0.0  ;;  %v214_v24 = vmul.f32 0.01, %v198_v16  ;;  %vm207_vm2 = vcmp.ge.f32.partialorder %v199_v17, 0.0  ;;  %v215_v25 = vmul.f32 0.01, %v199_v17 }
  0x14   : > { %vm208_vm3 = vcmp.ge.f32.partialorder %v200_v18, 0.0  ;;  %v216_v26 = vmul.f32 0.01, %v200_v18  ;;  %vm209_vm4 = vcmp.ge.f32.partialorder %v201_v20, 0.0  ;;  %v217_v27 = vmul.f32 0.01, %v201_v20 }
  0x15   : > { %v222_v28 = vsel %vm206_vm1, %v198_v16, %v214_v24  ;;  %v223_v29 = vsel %vm207_vm2, %v199_v17, %v215_v25  ;;  %vm210_vm5 = vcmp.ge.f32.partialorder %v202_v21, 0.0  ;;  %v218_v30 = vmul.f32 0.01, %v202_v21 }
  0x16   : > { %231 = vst.msk [vmem:[%s367_s25] sm:$0xff] %vm230_vm0, %v222_v28  ;;  %v224_v31 = vsel %vm208_vm3, %v200_v18, %v216_v26  ;;  %v225_v32 = vsel %vm209_vm4, %v201_v20, %v217_v27  ;;  %vm211_vm6 = vcmp.ge.f32.partialorder %v203_v22, 0.0  ;;  %v219_v33 = vmul.f32 0.01, %v203_v22 }
  0x17   : > { %232 = vst.msk [vmem:[%s367_s25 + $0x8] sm:$0xff] %vm230_vm0, %v223_v29  ;;  %v226_v34 = vsel %vm210_vm5, %v202_v21, %v218_v30  ;;  %v204_v35 = vadd.f32 %v315_v1, %v192_v19  ;;  %v205_v36 = vadd.f32 %v315_v1, %v193_v23 }
  0x18   : > { %233 = vst.msk [vmem:[%s367_s25 + $0x10] sm:$0xff] %vm230_vm0, %v224_v31  ;;  %v227_v37 = vsel %vm211_vm6, %v203_v22, %v219_v33 }
  0x19   : > { %234 = vst.msk [vmem:[%s367_s25 + $0x18] sm:$0xff] %vm230_vm0, %v225_v32  ;;  %vm212_vm7 = vcmp.ge.f32.partialorder %v204_v35, 0.0  ;;  %v220_v38 = vmul.f32 0.01, %v204_v35  ;;  %vm213_vm8 = vcmp.ge.f32.partialorder %v205_v36, 0.0 }
  0x1a   : > { %235 = vst.msk [vmem:[%s367_s25 + $0x20] sm:$0xff] %vm230_vm0, %v226_v34  ;;  %v221_v39 = vmul.f32 0.01, %v205_v36 }
  0x1b   : > { %236 = vst.msk [vmem:[%s367_s25 + $0x28] sm:$0xff] %vm230_vm0, %v227_v37  ;;  %v228_v40 = vsel %vm212_vm7, %v204_v35, %v220_v38 }
  0x1c   : > { %237 = vst.msk [vmem:[%s367_s25 + $0x30] sm:$0xff] %vm230_vm0, %v228_v40  ;;  %v229_v41 = vsel %vm213_vm8, %v205_v36, %v221_v39 }
  0x1d   : > { %238 = vst.msk [vmem:[%s367_s25 + $0x38] sm:$0xff] %vm230_vm0, %v229_v41 }
  0x1e PF: > { %s13_s12 = sadd.s32 1, %s322_s12  }
  0x1f   : > { %p10_p4 = scmp.ge.s32.totalorder %s13_s12, 4  }
  0x21   :  { %12 = sbr.rel (!%p10_p4) target bundleno = 1 (0x1), region = 62 }

// kernel: conv_block.2
= control target key start
LH: loop header
LB: loop body
LE: loop exit
PB: predicated region body
PF: predicated region fallthrough
CT: control target
= control target key end

     0   :  { %s495_s15 = smov 0   ;;  %s532_s0 = inlined_call_operand.vmem [shape: bf16[128,36], index: 0, kind: input, shape index: {}]   ;;  %s533_s1 = inlined_call_operand.vmem [shape: bf16[36,128], index: 1, kind: input, shape index: {}]   ;;  %s534_s2 = inlined_call_operand.vmem [shape: f32[128,8], index: 2, kind: output, shape index: {0}]   ;;  %s535_s3 = inlined_call_operand.vmem [shape: f32[4,1,128], index: 3, kind: output, shape index: {1}]   ;;  %s536_s4 = inlined_call_operand.vmem [shape: f32[4,1,128], index: 4, kind: output, shape index: {2}]  }
   0x1 LB: > { %s501_s16 = sadd.s32 4294967295, %s468_s15   ;;  %p422_p0 = scmp.ge.s32.totalorder %s468_s15, 1  ;;  %s468_s15 = sphi %s495_s15, %s15_s15  }
   0x2   : > { %p168_p1 = scmp.lt.s32.totalorder %s468_s15, 5 }
   0x4   : > { %p169_p2 = pnand %p422_p0, %p168_p1 }
   0x5   : > { %s423_s19 = sshll.u32 (!%p169_p2), %s501_s16, 2  ;;  %p212_p4 = scmp.lt.s32.totalorder (!%p169_p2), %s501_s16, 3 }
   0x6   : > { %172 = sbr.rel (%p169_p2) target bundleno = 183 (0xb7), region = 28  ;;  %p201_p3 = scmp.lt.s32.totalorder (!%p169_p2), %s423_s19, 15 }
   0xb   : > { %v227_v0 = vld [vmem:[%s533_s1 + $0x10] sm:$0x3]  ;;  %vm260_vm0 = vcmask 1041408   ;;  %s538_s19 = smov (!%p201_p3, %s423_s19), 15  ;;  %v450_v4 = vld [vmem:[%s533_s1 + $0x8] sm:$0xff]  ;;  %v449_v5 = vld [vmem:[%s533_s1] sm:$0xff] }
   0xc   : > { %v247_v1 = vunpack.c.l.b16 %v227_v0  ;;  %s424_s22 = sshll.u32 %s538_s19, 2  ;;  %vm253_vm1 = vcmask 293888   ;;  %s426_s28 = sshll.u32 %s538_s19, 3  ;;  %vm283_vm2 = vcmask 64512  }
   0xd   : > { %s204_s27 = scalar_lea.vmem %s532_s0, %s424_s22  ;;  %s210_s5 = scalar_lea.vmem %s534_s2, %s426_s28 }
   0xe   : > { %v250_v2 = vpack.c.b16 %v247_v1, %v247_v1  ;;  %v447_v6 = vld [vmem:[%s204_s27] sm:$0xff]  ;;  %v448_v7 = vld [vmem:[%s204_s27 + $0x8] sm:$0xff]  ;;  %s540_s16 = smov (!%p212_p4, %s501_s16), 3 }
   0xf   : > { %s214_s8 = scalar_lea.vmem %s535_s3, %s540_s16  ;;  %s217_s11 = scalar_lea.vmem %s536_s4, %s540_s16 }
  0x10   : > { %v262_v3 = vsel %vm260_vm0, %v250_v2, 0 }
  0x11   : > { %269 = vmatpush.bf16.msra.mxu0 %v262_v3  ;;  %451 = vmatpush.bf16.msra.mxu1 %v262_v3 }
  0x15   : > { %270 = vmatpush.bf16.msra.mxu0 %v450_v4  ;;  %452 = vmatpush.bf16.msra.mxu1 %v450_v4 }
  0x19   : > { %271 = vmatpush.bf16.msra.mxu0 %v449_v5  ;;  %453 = vmatpush.bf16.msra.mxu1 %v449_v5 }
  0x1c   : > { %443 = vmatmul.msk.bf16.vlgmr.msra.gmra.mxu0 %vm253_vm1, %v447_v6  ;;  %444 = vmatmul.msk.bf16.vlgmr.msra.gmra.mxu1 %vm253_vm1, %v448_v7 }
  0x99   : > { %v273_v8 = vpop.f32.mrf.mxu0  ;;  %v278_v9 = vpop.f32.mrf.mxu1 }
  0x9a   : > { %284 = vst.msk [vmem:[%s210_s5] sm:$0xff] %vm283_vm2, %v273_v8  ;;  %v298_v12 = vmul.f32 %v273_v8, %v273_v8  ;;  %v300_v15 = vmul.f32 %v278_v9, %v278_v9 }
  0x9b   : > { %286 = vst.msk [vmem:[%s210_s5 + $0x10] sm:$0xff] %vm283_vm2, %v278_v9 }
  0xa1   : > { %v275_v10 = vpop.f32.mrf.mxu0  ;;  %v280_v11 = vpop.f32.mrf.mxu1 }
  0xa2   : > { %285 = vst.msk [vmem:[%s210_s5 + $0x8] sm:$0xff] %vm283_vm2, %v275_v10  ;;  %v288_v13 = vadd.f32 %v275_v10, %v273_v8  ;;  %v299_v14 = vmul.f32 %v275_v10, %v275_v10  ;;  %v301_v19 = vmul.f32 %v280_v11, %v280_v11 }
  0xa3   : > { %287 = vst.msk [vmem:[%s210_s5 + $0x18] sm:$0xff] %vm283_vm2, %v280_v11 }
  0xa4   : > { %v302_v16 = vadd.f32 %v299_v14, %v298_v12  ;;  %v289_v17 = vadd.f32 %v288_v13, %v278_v9 }
  0xa6   : > { %v290_v18 = vadd.f32 %v289_v17, %v280_v11  ;;  %v303_v20 = vadd.f32 %v302_v16, %v300_v15 }
  0xa8   : > { %v291_v21 = vrot.slane %v290_v18, 4  ;;  %v304_v22 = vadd.f32 %v303_v20, %v301_v19 }
  0xaa   : > { %v292_v23 = vadd.f32 %v291_v21, %v290_v18  ;;  %v305_v24 = vrot.slane %v304_v22, 4 }
  0xac   : > { %v293_v25 = vrot.slane %v292_v23, 2  ;;  %v306_v26 = vadd.f32 %v305_v24, %v304_v22 }
  0xae   : > { %v294_v27 = vadd.f32 %v293_v25, %v292_v23  ;;  %v307_v28 = vrot.slane %v306_v26, 2 }
  0xb0   : > { %v295_v29 = vrot.slane %v294_v27, 1  ;;  %v308_v30 = vadd.f32 %v307_v28, %v306_v26 }
  0xb2   : > { %v296_v31 = vadd.f32 %v295_v29, %v294_v27  ;;  %v309_v32 = vrot.slane %v308_v30, 1 }
  0xb4   : > { %297 = vst [vmem:[%s214_s8] sm:$0x1] %v296_v31  ;;  %v310_v33 = vadd.f32 %v309_v32, %v308_v30 }
  0xb6   : > { %311 = vst [vmem:[%s217_s11] sm:$0x1] %v310_v33 }
  0xb7 PF: > { %s15_s15 = sadd.s32 1, %s468_s15  }
  0xb8   : > { %p12_p5 = scmp.ge.s32.totalorder %s15_s15, 6  }
  0xba   :  { %14 = sbr.rel (!%p12_p5) target bundleno = 1 (0x1), region = 82 }

</bundles_post_ra>
